<compile_context>
chip_gen: v7x
topology: tpu7x:2x2x1
jax: 0.10.0
libtpu: 0.0.40
codegen_flags: <defaults>
</compile_context>

<pallas_src>
import functools

import jax
import jax.numpy as jnp
from jax.experimental import pallas as pl
from jax.experimental.pallas import tpu as pltpu


OUT_PAD = 128  # lane-dense width for the final head output


# ---------------------------------------------------------------------------
# Fused kernel: all GINE layers + global_mean_pool + MLP head in one call
# ---------------------------------------------------------------------------

def fused_gnn_kernel(*refs, num_layers):
    scale_ref = refs[0]                                   # SMEM [L] = 1 + eps_l
    (x_ref, ea_ref, gsrc_ref, stgtT_ref, membT_ref, invc_ref) = refs[1:7]
    layer_refs = refs[7:7 + 4 * num_layers]
    w1_ref, b1_ref, w2_ref, b2_ref, out_ref = refs[7 + 4 * num_layers:]

    gsrc = gsrc_ref[...]                                  # [E, N]  0/1 f32
    stgtT = stgtT_ref[...]                                # [N, E]  0/1 f32
    ea = ea_ref[...]                                      # [E, edge_dim]

    h = x_ref[...]                                        # [N, Cin]
    for i in range(num_layers):
        we, be, w, b = layer_refs[4 * i:4 * i + 4]

        # edge embedding: Linear(edge_dim -> Cin)
        edge_feat = jnp.dot(ea, we[...],
                            preferred_element_type=jnp.float32) + be[...]     # [E, Cin]

        # gather x_j for every edge (one-hot matmul; exact)
        x_src = jnp.dot(gsrc, h, preferred_element_type=jnp.float32)          # [E, Cin]
        msg = jnp.maximum(x_src + edge_feat, 0.0)                             # [E, Cin]

        # scatter-add messages to target nodes (one-hot matmul; exact)
        aggr = jnp.dot(stgtT, msg, preferred_element_type=jnp.float32)        # [N, Cin]

        # GINEConv nn, fused into a single MXU dot: ((1+eps)*h + aggr) @ W + b
        h = (jnp.dot(scale_ref[i] * h + aggr, w[...],
                     preferred_element_type=jnp.float32) + b[...])            # [N, Cout]
        if i < num_layers - 1:
            h = jnp.maximum(h, 0.0)        # ReLU between conv layers (Dropout p=0)

    # global_mean_pool: 0/1 membership matmul, then f32 1/count scaling
    pooled = jnp.dot(membT_ref[...], h,
                     preferred_element_type=jnp.float32) * invc_ref[...]      # [Gp, d_out]

    # head: Linear -> ReLU -> Linear (output padded to a full (8,128) tile)
    hh = jnp.dot(pooled, w1_ref[...], preferred_element_type=jnp.float32) + b1_ref[...]
    hh = jnp.maximum(hh, 0.0)
    out_ref[...] = jnp.dot(hh, w2_ref[...],
                           preferred_element_type=jnp.float32) + b2_ref[...]  # [Gp, 128]


# ---------------------------------------------------------------------------
# Wrapper
# ---------------------------------------------------------------------------

_VMEM = pl.BlockSpec(memory_space=pltpu.MemorySpace.VMEM)
_SMEM = pl.BlockSpec(memory_space=pltpu.MemorySpace.SMEM)


def gnn_forward(params, x, edge_index, edge_attr, batch_idx, num_graphs):
    n = x.shape[0]
    src, tgt = edge_index[0], edge_index[1]

    # Sublane-pad the graph axis so the final store is a full (8,128) tile.
    g_pad = max(8, -(-num_graphs // 8) * 8)

    # Glue (data-dependent indexing, not the compute hot path): 0/1 one-hot
    # gather / scatter / pooling matrices, built directly in their final
    # orientation and kept in f32 (exact; no bf16 unpack work in-kernel).
    g_src = (src[:, None] == jnp.arange(n)[None, :]).astype(jnp.float32)        # [E, N]
    s_tgt_t = (jnp.arange(n)[:, None] == tgt[None, :]).astype(jnp.float32)      # [N, E]
    memb_t = (jnp.arange(g_pad)[:, None]
              == batch_idx[None, :]).astype(jnp.float32)                        # [Gp, N]
    counts = memb_t.sum(axis=1, keepdims=True)                                  # [Gp, 1]
    inv_counts = 1.0 / jnp.maximum(counts, 1.0)                                 # [Gp, 1]

    num_layers = len(params["gine"])
    # (1 + eps) per layer, delivered through SMEM (scalar path; no weight copies).
    scales = jnp.concatenate([lp["eps"] for lp in params["gine"]]) + 1.0        # [L]

    layer_args = []
    for lp in params["gine"]:
        layer_args += [lp["we"], lp["be"], lp["w"], lp["b"]]

    hp = params["head"]
    # zero-pad final Linear to a lane-dense [*, OUT_PAD] output
    w2p = jnp.pad(hp["w2"], ((0, 0), (0, OUT_PAD - hp["w2"].shape[1])))
    b2p = jnp.pad(hp["b2"], ((0, 0), (0, OUT_PAD - hp["b2"].shape[1])))

    n_vmem_in = 6 + len(layer_args) + 4
    # TODO(synk): for realistic N/E, switch to an edge-tiled grid (reduction
    # axis last, "arbitrary") with leading "parallel" node/graph axes (v7x 2 TC)
    # and scalar-prefetch index gather/scatter; also consider bf16 operands for
    # the big matmuls (relaxes the 1e-4 tolerance).  At this size grid=() with
    # everything VMEM-resident is optimal.
    out_padded = pl.pallas_call(
        functools.partial(fused_gnn_kernel, num_layers=num_layers),
        out_shape=jax.ShapeDtypeStruct((g_pad, OUT_PAD), jnp.float32),
        in_specs=[_SMEM] + [_VMEM] * n_vmem_in,
        out_specs=_VMEM,
        compiler_params=pltpu.CompilerParams(
            vmem_limit_bytes=32 * 1024 * 1024),
    )(scales, x, edge_attr, g_src, s_tgt_t, memb_t, inv_counts,
      *layer_args, hp["w1"], hp["b1"], w2p, b2p)

    return out_padded[:num_graphs, :1]


# ---------------------------------------------------------------------------
# Pure-JAX reference (for a correctness sanity check)
# ---------------------------------------------------------------------------

def gnn_reference(params, x, edge_index, edge_attr, batch_idx, num_graphs):
    src, tgt = edge_index[0], edge_index[1]
    h = x
    n_layers = len(params["gine"])
    for i, lp in enumerate(params["gine"]):
        ef = edge_attr @ lp["we"] + lp["be"]
        msg = jnp.maximum(h[src] + ef, 0.0)
        aggr = jax.ops.segment_sum(msg, tgt, num_segments=h.shape[0])
        h = ((1.0 + lp["eps"][0]) * h + aggr) @ lp["w"] + lp["b"]
        if i < n_layers - 1:
            h = jnp.maximum(h, 0.0)
    memb = jax.nn.one_hot(batch_idx, num_graphs, dtype=jnp.float32)
    counts = jnp.maximum(memb.sum(axis=0), 1.0)
    pooled = (memb.T @ h) / counts[:, None]
    hp = params["head"]
    out = jnp.maximum(pooled @ hp["w1"] + hp["b1"], 0.0) @ hp["w2"] + hp["b2"]
    return out


# ---------------------------------------------------------------------------
# Main
# ---------------------------------------------------------------------------

if __name__ == "__main__":
    key = jax.random.PRNGKey(0)

    # Model dims (mirrors GNNModel_sg_edge_attr_ddG(d_in, d_hidden, d_out,
    # edge_dim, num_layers=2, dp_rate=0))
    d_in, d_hidden, d_out, edge_dim = 8, 32, 16, 4
    num_layers = 2

    # Graph sizes
    N, E, G = 16, 32, 2

    keys = jax.random.split(key, 16)

    # Inputs
    x = jax.random.normal(keys[0], (N, d_in), dtype=jnp.float32)
    edge_index = jax.random.randint(keys[1], (2, E), 0, N, dtype=jnp.int32)
    edge_attr = jax.random.normal(keys[2], (E, edge_dim), dtype=jnp.float32)
    batch_idx = jnp.concatenate([jnp.zeros((N // 2,), jnp.int32),
                                 jnp.ones((N - N // 2,), jnp.int32)])

    # Deterministic parameter init (synthetic; shapes match the PyTorch module)
    def lin(k, fan_in, fan_out):
        kw, kb = jax.random.split(k)
        w = jax.random.normal(kw, (fan_in, fan_out), dtype=jnp.float32) * 0.1
        b = jax.random.normal(kb, (1, fan_out), dtype=jnp.float32) * 0.1
        return w, b

    gine_params = []
    in_ch = d_in
    kidx = 3
    eps_vals = [0.1, -0.05]   # train_eps=True; nonzero to exercise the scale path
    for l_idx in range(num_layers):
        out_ch = d_hidden if l_idx < num_layers - 1 else d_out
        we, be = lin(keys[kidx], edge_dim, in_ch); kidx += 1   # GINEConv.lin
        w, b = lin(keys[kidx], in_ch, out_ch); kidx += 1       # GINEConv.nn Linear
        gine_params.append({"we": we, "be": be, "w": w, "b": b,
                            "eps": jnp.full((1,), eps_vals[l_idx % len(eps_vals)],
                                            jnp.float32)})
        in_ch = d_hidden

    w1, b1 = lin(keys[kidx], d_out, 10); kidx += 1
    w2, b2 = lin(keys[kidx], 10, 1); kidx += 1
    params = {"gine": gine_params,
              "head": {"w1": w1, "b1": b1, "w2": w2, "b2": b2}}
    # Note: Dropout layers have dp_rate=0 -> identity; omitted.

    out = gnn_forward(params, x, edge_index, edge_attr, batch_idx, G)
    out = jax.block_until_ready(out)

    ref = gnn_reference(params, x, edge_index, edge_attr, batch_idx, G)
    assert out.shape == (G, 1)
    assert jnp.allclose(out, ref, atol=1e-4, rtol=1e-4), (out, ref)

    print("KERNEL_OK")
</pallas_src>

<mosaic_0001>
module attributes {stable_mosaic.version = 11 : i64} {
  func.func @fused_gnn_kernel(%arg0: memref<2xf32, #tpu.memory_space<smem>>, %arg1: memref<16x8xf32, #tpu.memory_space<vmem>>, %arg2: memref<32x4xf32, #tpu.memory_space<vmem>>, %arg3: memref<32x16xf32, #tpu.memory_space<vmem>>, %arg4: memref<16x32xf32, #tpu.memory_space<vmem>>, %arg5: memref<8x16xf32, #tpu.memory_space<vmem>>, %arg6: memref<8x1xf32, #tpu.memory_space<vmem>>, %arg7: memref<4x8xf32, #tpu.memory_space<vmem>>, %arg8: memref<1x8xf32, #tpu.memory_space<vmem>>, %arg9: memref<8x32xf32, #tpu.memory_space<vmem>>, %arg10: memref<1x32xf32, #tpu.memory_space<vmem>>, %arg11: memref<4x32xf32, #tpu.memory_space<vmem>>, %arg12: memref<1x32xf32, #tpu.memory_space<vmem>>, %arg13: memref<32x16xf32, #tpu.memory_space<vmem>>, %arg14: memref<1x16xf32, #tpu.memory_space<vmem>>, %arg15: memref<16x10xf32, #tpu.memory_space<vmem>>, %arg16: memref<1x10xf32, #tpu.memory_space<vmem>>, %arg17: memref<10x128xf32, #tpu.memory_space<vmem>>, %arg18: memref<1x128xf32, #tpu.memory_space<vmem>>, %arg19: memref<8x128xf32, #tpu.memory_space<vmem>>) attributes {dimension_semantics = [], scalar_prefetch = 0 : i64, scratch_operands = 0 : i64, tpu.core_type = #tpu.core_type<tc>} {
    %c0 = arith.constant 0 : index
    %c0_0 = arith.constant 0 : index
    %0 = vector.load %arg3[%c0, %c0_0] : memref<32x16xf32, #tpu.memory_space<vmem>>, vector<32x16xf32>
    %c0_1 = arith.constant 0 : index
    %c0_2 = arith.constant 0 : index
    %1 = vector.load %arg4[%c0_1, %c0_2] : memref<16x32xf32, #tpu.memory_space<vmem>>, vector<16x32xf32>
    %c0_3 = arith.constant 0 : index
    %c0_4 = arith.constant 0 : index
    %2 = vector.load %arg2[%c0_3, %c0_4] : memref<32x4xf32, #tpu.memory_space<vmem>>, vector<32x4xf32>
    %c0_5 = arith.constant 0 : index
    %c0_6 = arith.constant 0 : index
    %3 = vector.load %arg1[%c0_5, %c0_6] : memref<16x8xf32, #tpu.memory_space<vmem>>, vector<16x8xf32>
    %c0_7 = arith.constant 0 : index
    %c0_8 = arith.constant 0 : index
    %4 = vector.load %arg7[%c0_7, %c0_8] : memref<4x8xf32, #tpu.memory_space<vmem>>, vector<4x8xf32>
    %cst = arith.constant dense<0.000000e+00> : vector<32x8xf32>
    %5 = tpu.matmul %2, %4, %cst {dimension_numbers = #tpu.dot_dimension_numbers<[1], [0], [0], [1], [0, 0, 1, 1], [], []>} : vector<32x4xf32>, vector<4x8xf32>, vector<32x8xf32> -> vector<32x8xf32>
    %c0_9 = arith.constant 0 : index
    %c0_10 = arith.constant 0 : index
    %6 = vector.load %arg8[%c0_9, %c0_10] : memref<1x8xf32, #tpu.memory_space<vmem>>, vector<1x8xf32>
    %7 = vector.broadcast %6 : vector<1x8xf32> to vector<32x8xf32>
    %8 = arith.addf %5, %7 : vector<32x8xf32>
    %cst_11 = arith.constant dense<0.000000e+00> : vector<32x8xf32>
    %9 = tpu.matmul %0, %3, %cst_11 {dimension_numbers = #tpu.dot_dimension_numbers<[1], [0], [0], [1], [0, 0, 1, 1], [], []>} : vector<32x16xf32>, vector<16x8xf32>, vector<32x8xf32> -> vector<32x8xf32>
    %10 = arith.addf %9, %8 : vector<32x8xf32>
    %cst_12 = arith.constant 0.000000e+00 : f32
    %11 = vector.broadcast %cst_12 : f32 to vector<32x8xf32>
    %12 = arith.maximumf %10, %11 : vector<32x8xf32>
    %cst_13 = arith.constant dense<0.000000e+00> : vector<16x8xf32>
    %13 = tpu.matmul %1, %12, %cst_13 {dimension_numbers = #tpu.dot_dimension_numbers<[1], [0], [0], [1], [0, 0, 1, 1], [], []>} : vector<16x32xf32>, vector<32x8xf32>, vector<16x8xf32> -> vector<16x8xf32>
    %c0_14 = arith.constant 0 : index
    %14 = memref.load %arg0[%c0_14] : memref<2xf32, #tpu.memory_space<smem>>
    %15 = vector.broadcast %14 : f32 to vector<16x8xf32>
    %16 = arith.mulf %15, %3 : vector<16x8xf32>
    %17 = arith.addf %16, %13 : vector<16x8xf32>
    %c0_15 = arith.constant 0 : index
    %c0_16 = arith.constant 0 : index
    %18 = vector.load %arg9[%c0_15, %c0_16] : memref<8x32xf32, #tpu.memory_space<vmem>>, vector<8x32xf32>
    %cst_17 = arith.constant dense<0.000000e+00> : vector<16x32xf32>
    %19 = tpu.matmul %17, %18, %cst_17 {dimension_numbers = #tpu.dot_dimension_numbers<[1], [0], [0], [1], [0, 0, 1, 1], [], []>} : vector<16x8xf32>, vector<8x32xf32>, vector<16x32xf32> -> vector<16x32xf32>
    %c0_18 = arith.constant 0 : index
    %c0_19 = arith.constant 0 : index
    %20 = vector.load %arg10[%c0_18, %c0_19] : memref<1x32xf32, #tpu.memory_space<vmem>>, vector<1x32xf32>
    %21 = vector.broadcast %20 : vector<1x32xf32> to vector<16x32xf32>
    %22 = arith.addf %19, %21 : vector<16x32xf32>
    %cst_20 = arith.constant 0.000000e+00 : f32
    %23 = vector.broadcast %cst_20 : f32 to vector<16x32xf32>
    %24 = arith.maximumf %22, %23 : vector<16x32xf32>
    %c0_21 = arith.constant 0 : index
    %c0_22 = arith.constant 0 : index
    %25 = vector.load %arg11[%c0_21, %c0_22] : memref<4x32xf32, #tpu.memory_space<vmem>>, vector<4x32xf32>
    %cst_23 = arith.constant dense<0.000000e+00> : vector<32x32xf32>
    %26 = tpu.matmul %2, %25, %cst_23 {dimension_numbers = #tpu.dot_dimension_numbers<[1], [0], [0], [1], [0, 0, 1, 1], [], []>} : vector<32x4xf32>, vector<4x32xf32>, vector<32x32xf32> -> vector<32x32xf32>
    %c0_24 = arith.constant 0 : index
    %c0_25 = arith.constant 0 : index
    %27 = vector.load %arg12[%c0_24, %c0_25] : memref<1x32xf32, #tpu.memory_space<vmem>>, vector<1x32xf32>
    %28 = vector.broadcast %27 : vector<1x32xf32> to vector<32x32xf32>
    %29 = arith.addf %26, %28 : vector<32x32xf32>
    %cst_26 = arith.constant dense<0.000000e+00> : vector<32x32xf32>
    %30 = tpu.matmul %0, %24, %cst_26 {dimension_numbers = #tpu.dot_dimension_numbers<[1], [0], [0], [1], [0, 0, 1, 1], [], []>} : vector<32x16xf32>, vector<16x32xf32>, vector<32x32xf32> -> vector<32x32xf32>
    %31 = arith.addf %30, %29 : vector<32x32xf32>
    %cst_27 = arith.constant 0.000000e+00 : f32
    %32 = vector.broadcast %cst_27 : f32 to vector<32x32xf32>
    %33 = arith.maximumf %31, %32 : vector<32x32xf32>
    %cst_28 = arith.constant dense<0.000000e+00> : vector<16x32xf32>
    %34 = tpu.matmul %1, %33, %cst_28 {dimension_numbers = #tpu.dot_dimension_numbers<[1], [0], [0], [1], [0, 0, 1, 1], [], []>} : vector<16x32xf32>, vector<32x32xf32>, vector<16x32xf32> -> vector<16x32xf32>
    %c1 = arith.constant 1 : index
    %35 = memref.load %arg0[%c1] : memref<2xf32, #tpu.memory_space<smem>>
    %36 = vector.broadcast %35 : f32 to vector<16x32xf32>
    %37 = arith.mulf %36, %24 : vector<16x32xf32>
    %38 = arith.addf %37, %34 : vector<16x32xf32>
    %c0_29 = arith.constant 0 : index
    %c0_30 = arith.constant 0 : index
    %39 = vector.load %arg13[%c0_29, %c0_30] : memref<32x16xf32, #tpu.memory_space<vmem>>, vector<32x16xf32>
    %cst_31 = arith.constant dense<0.000000e+00> : vector<16x16xf32>
    %40 = tpu.matmul %38, %39, %cst_31 {dimension_numbers = #tpu.dot_dimension_numbers<[1], [0], [0], [1], [0, 0, 1, 1], [], []>} : vector<16x32xf32>, vector<32x16xf32>, vector<16x16xf32> -> vector<16x16xf32>
    %c0_32 = arith.constant 0 : index
    %c0_33 = arith.constant 0 : index
    %41 = vector.load %arg14[%c0_32, %c0_33] : memref<1x16xf32, #tpu.memory_space<vmem>>, vector<1x16xf32>
    %42 = vector.broadcast %41 : vector<1x16xf32> to vector<16x16xf32>
    %43 = arith.addf %40, %42 : vector<16x16xf32>
    %c0_34 = arith.constant 0 : index
    %c0_35 = arith.constant 0 : index
    %44 = vector.load %arg5[%c0_34, %c0_35] : memref<8x16xf32, #tpu.memory_space<vmem>>, vector<8x16xf32>
    %cst_36 = arith.constant dense<0.000000e+00> : vector<8x16xf32>
    %45 = tpu.matmul %44, %43, %cst_36 {dimension_numbers = #tpu.dot_dimension_numbers<[1], [0], [0], [1], [0, 0, 1, 1], [], []>} : vector<8x16xf32>, vector<16x16xf32>, vector<8x16xf32> -> vector<8x16xf32>
    %c0_37 = arith.constant 0 : index
    %c0_38 = arith.constant 0 : index
    %46 = vector.load %arg6[%c0_37, %c0_38] : memref<8x1xf32, #tpu.memory_space<vmem>>, vector<8x1xf32>
    %47 = vector.broadcast %46 : vector<8x1xf32> to vector<8x16xf32>
    %48 = arith.mulf %45, %47 : vector<8x16xf32>
    %c0_39 = arith.constant 0 : index
    %c0_40 = arith.constant 0 : index
    %49 = vector.load %arg15[%c0_39, %c0_40] : memref<16x10xf32, #tpu.memory_space<vmem>>, vector<16x10xf32>
    %cst_41 = arith.constant dense<0.000000e+00> : vector<8x10xf32>
    %50 = tpu.matmul %48, %49, %cst_41 {dimension_numbers = #tpu.dot_dimension_numbers<[1], [0], [0], [1], [0, 0, 1, 1], [], []>} : vector<8x16xf32>, vector<16x10xf32>, vector<8x10xf32> -> vector<8x10xf32>
    %c0_42 = arith.constant 0 : index
    %c0_43 = arith.constant 0 : index
    %51 = vector.load %arg16[%c0_42, %c0_43] : memref<1x10xf32, #tpu.memory_space<vmem>>, vector<1x10xf32>
    %52 = vector.broadcast %51 : vector<1x10xf32> to vector<8x10xf32>
    %53 = arith.addf %50, %52 : vector<8x10xf32>
    %cst_44 = arith.constant 0.000000e+00 : f32
    %54 = vector.broadcast %cst_44 : f32 to vector<8x10xf32>
    %55 = arith.maximumf %53, %54 : vector<8x10xf32>
    %c0_45 = arith.constant 0 : index
    %c0_46 = arith.constant 0 : index
    %56 = vector.load %arg17[%c0_45, %c0_46] : memref<10x128xf32, #tpu.memory_space<vmem>>, vector<10x128xf32>
    %cst_47 = arith.constant dense<0.000000e+00> : vector<8x128xf32>
    %57 = tpu.matmul %55, %56, %cst_47 {dimension_numbers = #tpu.dot_dimension_numbers<[1], [0], [0], [1], [0, 0, 1, 1], [], []>} : vector<8x10xf32>, vector<10x128xf32>, vector<8x128xf32> -> vector<8x128xf32>
    %c0_48 = arith.constant 0 : index
    %c0_49 = arith.constant 0 : index
    %58 = vector.load %arg18[%c0_48, %c0_49] : memref<1x128xf32, #tpu.memory_space<vmem>>, vector<1x128xf32>
    %59 = vector.broadcast %58 : vector<1x128xf32> to vector<8x128xf32>
    %60 = arith.addf %57, %59 : vector<8x128xf32>
    %c0_50 = arith.constant 0 : index
    %c0_51 = arith.constant 0 : index
    %61 = vector.load %arg19[%c0_50, %c0_51] : memref<8x128xf32, #tpu.memory_space<vmem>>, vector<8x128xf32>
    tpu.vector_store %arg19[%c0_50, %c0_51], %60 {strides = array<i32>} : memref<8x128xf32, #tpu.memory_space<vmem>>, vector<8x128xf32>,
    return
  }
}

</mosaic_0001>

<bundles_post_ra>
// kernel: tpu_custom_call.1
= control target key start
LH: loop header
LB: loop body
LE: loop exit
PB: predicated region body
PF: predicated region fallthrough
CT: control target
= control target key end

     0   :  { %s1659_s0 = inlined_call_operand.vmem [shape: f32[2], index: 0, kind: input, shape index: {}]   ;;  %s1660_s1 = inlined_call_operand.vmem [shape: f32[16,8], index: 1, kind: input, shape index: {}]   ;;  %s1661_s2 = inlined_call_operand.vmem [shape: f32[32,4], index: 2, kind: input, shape index: {}]   ;;  %s1662_s3 = inlined_call_operand.vmem [shape: f32[32,16], index: 3, kind: input, shape index: {}]   ;;  %s1663_s4 = inlined_call_operand.vmem [shape: f32[16,32], index: 4, kind: input, shape index: {}]   ;;  %s1664_s5 = inlined_call_operand.vmem [shape: f32[8,16], index: 5, kind: input, shape index: {}]   ;;  %s1665_s6 = inlined_call_operand.vmem [shape: f32[8,1], index: 6, kind: input, shape index: {}]   ;;  %s1666_s7 = inlined_call_operand.vmem [shape: f32[4,8], index: 7, kind: input, shape index: {}]   ;;  %s1667_s8 = inlined_call_operand.vmem [shape: f32[1,8], index: 8, kind: input, shape index: {}]   ;;  %s1668_s9 = inlined_call_operand.vmem [shape: f32[8,32], index: 9, kind: input, shape index: {}]   ;;  %s1669_s10 = inlined_call_operand.vmem [shape: f32[1,32], index: 10, kind: input, shape index: {}]   ;;  %s1670_s11 = inlined_call_operand.vmem [shape: f32[4,32], index: 11, kind: input, shape index: {}]   ;;  %s1671_s12 = inlined_call_operand.vmem [shape: f32[1,32], index: 12, kind: input, shape index: {}]   ;;  %s1672_s13 = inlined_call_operand.vmem [shape: f32[32,16], index: 13, kind: input, shape index: {}]   ;;  %s1673_s14 = inlined_call_operand.vmem [shape: f32[1,16], index: 14, kind: input, shape index: {}]   ;;  %s1674_s15 = inlined_call_operand.vmem [shape: f32[16,10], index: 15, kind: input, shape index: {}]   ;;  %s1675_s16 = inlined_call_operand.vmem [shape: f32[1,10], index: 16, kind: input, shape index: {}]   ;;  %s1676_s17 = inlined_call_operand.vmem [shape: f32[10,128], index: 17, kind: input, shape index: {}]   ;;  %s1677_s18 = inlined_call_operand.vmem [shape: f32[1,128], index: 18, kind: input, shape index: {}]   ;;  %s1678_s19 = inlined_call_operand.hbm [shape: f32[8,128], index: 19, kind: output, shape index: {}]  }
   0x1   :  { %1682 = sst [smem:[#allocation8_spill]] %s1659_s0 }
   0x2   :  { %1683 = sst [smem:[#allocation9_spill]] %s1660_s1 }
   0x3   :  { %1684 = sst [smem:[#allocation10_spill]] %s1661_s2 }
   0x4   :  { %1685 = sst [smem:[#allocation11_spill]] %s1662_s3 }
   0x5   :  { %24 = vsyncpa [#allocation4], 0 }
   0x6   :  { %25 = vsyncpa [#allocation3], 0  ;;  %s1686_s20 = sld [smem:[#allocation8_spill]] }
   0xc   :  { %s32_s21 = sshll.u32 %s1686_s20, 4  ;;  %s33_s21 = int_to_ptr.vmem [resolvable:$true] %s32_s21 }
   0xd   :  { %s1355_s1 = scalar_lea.vmem %s33_s21, 16  ;;  %p1360_p1 = scmp.lt.s32.totalorder %s33_s21, %s33_s21 }
   0xe   :  { %p1356_p0 = scmp.ne.s32.totalorder %s33_s21, %s1355_s1  ;;  %p1361_p2 = scmp.lt.s32.totalorder %s1355_s1, %s1355_s1 }
  0x10   :  { %p1362_p3 = por %p1361_p2, %p1360_p1 }
  0x12   :  { %p1363_p4 = pnand %p1362_p3, %p1356_p0 }
  0x14   :  { %1366 = shalt.err (!%p1363_p4)
}
  0x15   :  { %s1393_s22 = smov [#allocation2]  }
  0x16   :  { %35 = dma.vmem_to_smem %s33_s21, 16, %s1393_s22, [#allocation4]  }
  0x17   :  { %1389 = dma.done.wait [#allocation4], 16  }
  0x18   :  { %1390 = vsyncadd [#allocation4], 4294967280 }
  0x19   :  { %75 = sfence }
  0x1a   :  { %v88_v0 = vld [vmem:[%s1666_s7] sm:$0xf]  ;;  %vm109_vm0 = vcmask 1043456   ;;  %s1687_s3 = sld [smem:[#allocation10_spill]]  ;;  %vm96_vm1 = vcmask 31744   ;;  %s1688_s30 = sld [smem:[#allocation9_spill]] }
  0x1b   :  { %1194 = vmatprep.subr.msk.mxu0 %vm109_vm0, %v88_v0  ;;  %s1689_s24 = sld [smem:[#allocation11_spill]]  ;;  %vm198_vm2 = vcmask 130048   ;;  %v80_v12 = vld [vmem:[%s1663_s4] sm:$0xff]  ;;  %vm300_vm3 = vcmask 261120   ;;  %v81_v28 = vld [vmem:[%s1663_s4 + $0x8] sm:$0xff]  ;;  %s382_s2 = sld [smem:[#allocation2]] }
  0x1c   :  { %1195 = vmatpush3.msk.msra.mxu0 %vm109_vm0, %v88_v0  ;;  %1220 = vmatprep.mubr.msk.f32.mxu1 %vm300_vm3, %v80_v12  ;;  %v1105_v13 = vld [vmem:[%s1667_s8] ss:$0 sm:$0xff]  ;;  %vm396_vm4 = vcmask 64512   ;;  %v747_v60 = vld [vmem:[%s1672_s13 + $0x8] sm:$0xff]  ;;  %v748_v0 = vld [vmem:[%s1672_s13 + $0x10] sm:$0xff]  ;;  %s1132_s0 = sld [smem:[#allocation2 + $0x1]] }
  0x1d   :  { %v388_v29 = vld [vmem:[%s1668_s9] sm:$0xff]  ;;  %vm1395_vm5 = vmmov 0   ;;  %vm1015_vm6 = vcmask 1041408   ;;  %vm1398_vm7 = vmmov 1   ;;  %vm1011_vm9 = vcmask 80896  }
  0x1e   :  { %v480_v37 = vld [vmem:[%s1670_s11] sm:$0xf]  ;;  %vm1329_vm8 = vmpackc.low %vm1015_vm6, %vm1398_vm7 }
  0x1f   :  { %v1117_v38 = vld [vmem:[%s1669_s10] ss:$0 sm:$0xff] }
  0x20   :  { %v1509_v1 = vld [vmem:[%s1687_s3] sm:$0xff]  ;;  %v1514_v2 = vld [vmem:[%s1687_s3 + $0x8] sm:$0xff]  ;;  %v1522_v3 = vld [vmem:[%s1687_s3 + $0x10] sm:$0xff] }
  0x21   :  { %1196 = vmatprep.mubr.msk.f32.mxu0 %vm96_vm1, %v1509_v1  ;;  %v86_v4 = vld [vmem:[%s1688_s30] sm:$0xff]  ;;  %v87_v5 = vld [vmem:[%s1688_s30 + $0x8] sm:$0xff]  ;;  %v85_v7 = vld [vmem:[%s1687_s3 + $0x18] sm:$0xff]  ;;  %v383_v30 = vstv %s382_s2 }
  0x22   :  { %1197 = vmatmul.mubr.msk.f32.vlgmr.msra.gmra.mrb[0].mxu0 %vm96_vm1, %v1514_v2  ;;  %v1289_v6 = vpack.c.bf16 %v87_v5, %v86_v4  ;;  %v76_v8 = vld [vmem:[%s1689_s24] sm:$0xff]  ;;  %v1546_v9 = vld [vmem:[%s1689_s24 + $0x8] sm:$0xff]  ;;  %v1551_v10 = vld [vmem:[%s1689_s24 + $0x10] sm:$0xff]  ;;  %v384_v31 = vmul.f32 %v383_v30, %v86_v4  ;;  %v385_v32 = vmul.f32 %v383_v30, %v87_v5 }
  0x23   :  { %1199 = vmatprep.mubr.msk.f32.mxu0 %vm96_vm1, %v1522_v3  ;;  %v79_v11 = vld [vmem:[%s1689_s24 + $0x18] sm:$0xff]  ;;  %v1120_v46 = vld [vmem:[%s1671_s12] ss:$0 sm:$0xff] }
  0x24   :  { %1290 = vmatprep.subr.bf16.mxu0 %v1289_v6  ;;  %v746_v59 = vld [vmem:[%s1672_s13] sm:$0xff] }
  0x25   :  { %1292 = vmatpush3.bf16.msra.mxu0 %v1289_v6  ;;  %v1313_v63 = vpack.c.bf16 %v747_v60, %v746_v59 }
  0x26   :  { %1200 = vmatmul.mubr.msk.f32.gmra.mrb[2].mxu0 %vm96_vm1, %v85_v7 }
  0x27   :  { %1206 = vmatprep.mubr.msk.f32.mxu0 %vm198_vm2, %v76_v8 }
  0x2a   :  { %1207 = vmatmul.mubr.msk.f32.vlgmr.msra.gmra.mrb[0].mxu0 %vm198_vm2, %v1546_v9 }
  0x2b   :  { %1209 = vmatprep.mubr.msk.f32.mxu0 %vm198_vm2, %v1551_v10 }
  0x2e   :  { %1210 = vmatmul.mubr.msk.f32.gmra.mrb[2].mxu0 %vm198_vm2, %v79_v11 }
  0x2f   :  { %1254 = vmatprep.mubr.msk.f32.mxu0 %vm300_vm3, %v80_v12  ;;  %v912_v12 = vld [vmem:[%s1665_s6] sm:$0xff] }
  0xfd   :  { %v1208_v14 = vpop.f32.mrb[0].mxu0 }
  0xfe   :  { %v1331_v15 = vadd.f32 %v1208_v14, %v1105_v13  ;;  %v277_v16 = vpop.f32.mrb[1].mxu0  ;;  %v920_v14 = vld [vmem:[%s1674_s15 + $0x8] sm:$0xff] }
  0xff   :  { %v1332_v17 = vadd.f32 %v1105_v13, %v277_v16 }
 0x100   :  { %v297_v18 = vmax.f32 %v1331_v15, 0.0  ;;  %v1397_v15 = vmov 0  }
 0x101   :  { %v296_v19 = vmax.f32 %v1332_v17, 0.0  ;;  %v1211_v20 = vpop.f32.mrb[2].mxu0  ;;  %1354 = vset.pattern.permute.xlu0 %v1397_v15  ;;  %v1133_v17 = vld [vmem:[%s1673_s14] ss:$0 sm:$0xff] }
 0x102   :  { %v1333_v21 = vadd.f32 %v1211_v20, %v1105_v13  ;;  %v287_v22 = vpop.f32.mrb[3].mxu0  ;;  %915 = vperm.xlu0 %1354, %v912_v12  }
 0x103   :  { %v1334_v23 = vadd.f32 %v1105_v13, %v287_v22  ;;  %v1293_v24 = vpack.c.bf16 %v297_v18, %v296_v19  ;;  %v919_v13 = vld [vmem:[%s1674_s15] sm:$0xff] }
 0x104   :  { %v299_v25 = vmax.f32 %v1333_v21, 0.0  ;;  %v1325_v16 = vpack.c.bf16 %v920_v14, %v919_v13 }
 0x105   :  { %v298_v26 = vmax.f32 %v1334_v23, 0.0  ;;  %1294 = vmatprep.subr.bf16.mxu1 %v1293_v24  ;;  %v838_v23 = vld [vmem:[%s1664_s5] sm:$0xff] }
 0x106   :  { %1296 = vmatpush3.bf16.msra.mxu1 %v1293_v24 }
 0x107   :  { %v1297_v27 = vpack.c.bf16 %v299_v25, %v298_v26 }
 0x109   :  { %1298 = vmatprep.subr.bf16.mxu1 %v1297_v27 }
 0x10a   :  { %1300 = vmatpush3.bf16.msra.mxu1 %v1297_v27 }
 0x10b   :  { %1223 = vmatprep.subr.mxu1 %v388_v29 }
 0x10d   :  { %1221 = vmatmul.mubr.msk.f32.vlgmr.msra.gmra.mrb[0].mxu1 %vm300_vm3, %v81_v28 }
 0x10e   :  { %1224 = vmatpush3.msra.mxu1 %v388_v29  ;;  %v1003_v29 = vld [vmem:[%s1676_s17 + $0x8] sm:$0x3] }
 0x10f   :  { %1228 = vmatprep.subr.msk.mxu1 %vm109_vm0, %v480_v37 }
 0x181   :  { %v916_v24 = vpop.permute.xlu0 %915 }
 0x1e0   :  { %v1222_v33 = vpop.f32.mrb[0].mxu1 }
 0x1e1   :  { %v373_v34 = vpop.f32.mrb[1].mxu1  ;;  %v387_v36 = vadd.f32 %v1222_v33, %v385_v32 }
 0x1e2   :  { %v386_v35 = vadd.f32 %v384_v31, %v373_v34  ;;  %v1137_v31 = vld [vmem:[%s1675_s16] ss:$0 sm:$0xff] }
 0x1e4   :  { %1225 = vmatprep.mubr.msk.f32.mxu1 %vm396_vm4, %v386_v35 }
 0x1e5   :  { %1226 = vmatmul.mubr.msk.f32.vlgmr.msra.gmra.mrb[2].mxu1 %vm396_vm4, %v387_v36  ;;  %v1139_v36 = vld [vmem:[%s1677_s18] ss:$0 sm:$0xff] }
 0x1e6   :  { %1230 = vmatprep.mubr.msk.f32.mxu1 %vm96_vm1, %v1509_v1  ;;  %1229 = vmatpush3.msk.msra.mxu1 %vm109_vm0, %v480_v37  ;;  %v749_v1 = vld [vmem:[%s1672_s13 + $0x18] sm:$0xff] }
 0x1e9   :  { %1231 = vmatmul.mubr.msk.f32.vlgmr.msra.gmra.mrb[4].mxu1 %vm96_vm1, %v1514_v2  ;;  %v1317_v2 = vpack.c.bf16 %v749_v1, %v748_v0 }
 0x1ea   :  { %1233 = vmatprep.mubr.msk.f32.mxu1 %vm96_vm1, %v1522_v3  ;;  %v741_v3 = vstv %s1132_s0 }
 0x1ed   :  { %1234 = vmatmul.mubr.msk.f32.gmra.mrb[6].mxu1 %vm96_vm1, %v85_v7 }
 0x1ee   :  { %1240 = vmatprep.mubr.msk.f32.mxu1 %vm198_vm2, %v76_v8 }
 0x2b8   :  { %v1227_v39 = vpop.f32.mrb[2].mxu1 }
 0x2b9   :  { %v475_v40 = vadd.f32 %v1227_v39, %v1117_v38  ;;  %v469_v41 = vpop.f32.mrb[3].mxu1 }
 0x2ba   :  { %v470_v42 = vadd.f32 %v1117_v38, %v469_v41 }
 0x2bb   :  { %v479_v43 = vmax.f32 %v475_v40, 0.0 }
 0x2bc   :  { %v478_v44 = vmax.f32 %v470_v42, 0.0 }
 0x2bd   :  { %v743_v4 = vmul.f32 %v741_v3, %v479_v43 }
 0x2be   :  { %v1301_v45 = vpack.c.bf16 %v479_v43, %v478_v44  ;;  %v742_v6 = vmul.f32 %v741_v3, %v478_v44 }
 0x2c0   :  { %1302 = vmatprep.subr.bf16.mxu1 %v1301_v45 }
 0x2c1   :  { %1304 = vmatpush3.bf16.msra.mxu1 %v1301_v45 }
 0x2c4   :  { %1241 = vmatmul.mubr.msk.f32.vlgmr.msra.gmra.mrb[4].mxu1 %vm198_vm2, %v1546_v9 }
 0x2c5   :  { %1243 = vmatprep.mubr.msk.f32.mxu1 %vm198_vm2, %v1551_v10  ;;  %v1394_v10 = vmov 0.0|0.0  }
 0x2c6   :  { %1324 = vmatprep.subr.bf16.mxu1 %v1394_v10 }
 0x2c7   :  { %1326 = vmatpush3.bf16.msra.mxu1 %v1325_v16 }
 0x2c8   :  { %1244 = vmatmul.mubr.msk.f32.gmra.mrb[6].mxu1 %vm198_vm2, %v79_v11  ;;  %v1396_v11 = vmov 0.0  }
 0x2c9   :  { %1279 = vmatprep.mubr.msk.f32.mxu1 %vm1395_vm5, %v1396_v11 }
 0x397   :  { %v1242_v47 = vpop.f32.mrb[4].mxu1 }
 0x398   :  { %v1335_v48 = vadd.f32 %v1242_v47, %v1120_v46  ;;  %v642_v49 = vpop.f32.mrb[5].mxu1 }
 0x399   :  { %v1336_v50 = vadd.f32 %v1120_v46, %v642_v49 }
 0x39a   :  { %v662_v51 = vmax.f32 %v1335_v48, 0.0 }
 0x39b   :  { %v661_v52 = vmax.f32 %v1336_v50, 0.0  ;;  %v1245_v53 = vpop.f32.mrb[6].mxu1 }
 0x39c   :  { %v1337_v54 = vadd.f32 %v1245_v53, %v1120_v46  ;;  %v652_v55 = vpop.f32.mrb[7].mxu1 }
 0x39d   :  { %v1305_v56 = vpack.c.bf16 %v662_v51, %v661_v52  ;;  %v1338_v57 = vadd.f32 %v1120_v46, %v652_v55 }
 0x39e   :  { %v664_v58 = vmax.f32 %v1337_v54, 0.0 }
 0x39f   :  { %v663_v61 = vmax.f32 %v1338_v57, 0.0  ;;  %1306 = vmatprep.subr.bf16.mxu0 %v1305_v56 }
 0x3a0   :  { %1308 = vmatpush3.bf16.msra.mxu0 %v1305_v56 }
 0x3a1   :  { %v1309_v62 = vpack.c.bf16 %v664_v58, %v663_v61 }
 0x3a3   :  { %1310 = vmatprep.subr.bf16.mxu0 %v1309_v62 }
 0x3a4   :  { %1312 = vmatpush3.bf16.msra.mxu0 %v1309_v62 }
 0x3a5   :  { %1314 = vmatprep.subr.bf16.mxu0 %v1313_v63 }
 0x3a7   :  { %1255 = vmatmul.mubr.msk.f32.vlgmr.msra.gmra.mrb[4].mxu0 %vm300_vm3, %v81_v28  ;;  %v1002_v28 = vld [vmem:[%s1676_s17] sm:$0xff]  ;;  %s1399_s17 = smov [#allocation5]  }
 0x3a8   :  { %1316 = vmatpush3.bf16.msra.mxu0 %v1313_v63  ;;  %v1328_v30 = vpack.c.bf16 %v1003_v29, %v1002_v28  ;;  %s1096_s10 = sshll.u32 %s1399_s17, 4  ;;  %s1097_s10 = int_to_ptr.vmem [resolvable:$true] %s1096_s10 }
 0x3a9   :  { %1318 = vmatprep.subr.bf16.mxu0 %v1317_v2  ;;  %s1367_s26 = scalar_lea.vmem %s1097_s10, 128  ;;  %p1372_p6 = scmp.lt.s32.totalorder %s1097_s10, %s1097_s10 }
 0x3aa   :  { %p1368_p5 = scmp.ne.s32.totalorder %s1097_s10, %s1367_s26  ;;  %p1373_p7 = scmp.lt.s32.totalorder %s1367_s26, %s1367_s26 }
 0x3ac   :  { %1320 = vmatpush3.bf16.msra.mxu0 %v1317_v2  ;;  %p1374_p8 = por %p1373_p7, %p1372_p6 }
 0x3ad   :  { %1321 = vmatprep.subr.bf16.mxu0 %v1394_v10 }
 0x3ae   :  { %p1375_p9 = pnand %p1374_p8, %p1368_p5 }
 0x47a   :  { %v1256_v5 = vpop.f32.mrb[4].mxu0 }
 0x47b   :  { %v745_v7 = vadd.f32 %v1256_v5, %v743_v4  ;;  %v731_v8 = vpop.f32.mrb[5].mxu0 }
 0x47c   :  { %v744_v9 = vadd.f32 %v742_v6, %v731_v8 }
 0x47e   :  { %1265 = vmatprep.mubr.msk.f32.mxu0 %vm300_vm3, %v744_v9 }
 0x47f   :  { %1266 = vmatmul.mubr.msk.f32.vlgmr.msra.gmra.mrb[6].mxu0 %vm300_vm3, %v745_v7 }
 0x480   :  { %1272 = vmatprep.mubr.msk.f32.mxu0 %vm1395_vm5, %v1396_v11 }
 0x552   :  { %v1267_v18 = vpop.f32.mrb[6].mxu0 }
 0x553   :  { %v835_v19 = vadd.f32 %v1267_v18, %v1133_v17  ;;  %v829_v20 = vpop.f32.mrb[7].mxu0 }
 0x554   :  { %v830_v21 = vadd.f32 %v1133_v17, %v829_v20 }
 0x556   :  { %v1322_v22 = vpack.c.bf16 %v835_v19, %v830_v21 }
 0x558   :  { %1323 = vmatpush3.bf16.msra.mxu0 %v1322_v22 }
 0x559   :  { %1327 = vmatprep.subr.bf16.mxu0 %v1394_v10 }
 0x55b   :  { %1273 = vmatmul.mubr.msk.f32.vlgmr.msra.gmra.mrb[8].mxu0 %vm198_vm2, %v838_v23 }
 0x55c   :  { %1286 = vmatprep.mubr.msk.f32.mxu0 %vm1395_vm5, %v1396_v11  ;;  %1330 = vmatpush3.bf16.msk.msra.mxu0 %vm1329_vm8, %v1328_v30 }
 0x62e   :  { %v908_v25 = vpop.f32.mrb[8].mxu0 }
 0x62f   :  { %v918_v26 = vmul.f32 %v916_v24, %v908_v25  ;;  %v1274_v27 = vpop.f32.mrb[9].mxu0 }
 0x631   :  { %1280 = vmatmul.mubr.msk.f32.vlgmr.msra.gmra.mrb[8].mxu1 %vm198_vm2, %v918_v26 }
 0x704   :  { %v997_v32 = vpop.f32.mrb[8].mxu1 }
 0x705   :  { %v998_v33 = vadd.f32 %v1137_v31, %v997_v32  ;;  %v1281_v34 = vpop.f32.mrb[9].mxu1 }
 0x707   :  { %v1001_v35 = vmax.f32 %v998_v33, 0.0 }
 0x709   :  { %1287 = vmatmul.mubr.msk.f32.vlgmr.msra.gmra.mrb[10].mxu0 %vm1011_vm9, %v1001_v35 }
 0x7dc   :  { %v1085_v37 = vpop.f32.mrb[10].mxu0 }
 0x7dd   :  { %v1086_v38 = vadd.f32 %v1139_v36, %v1085_v37  ;;  %v1288_v39 = vpop.f32.mrb[11].mxu0 }
 0x7df   :  { %1089 = vst [vmem:[#allocation5] sm:$0xff] %v1086_v38 }
 0x7e0   :  { %1378 = shalt.err (!%p1375_p9)
}
 0x7e1   :  { %s1379_s28 = scalar_lea.hbm %s1678_s19, 128 }
 0x7e2   :  { %p1380_p10 = scmp.ne.s32.totalorder %s1678_s19, %s1379_s28  ;;  %p1383_p11 = scmp.lt.u32.totalorder %s1379_s28, %s1678_s19 }
 0x7e4   :  { %p1385_p12 = pnand %p1383_p11, %p1380_p10 }
 0x7e6   :  { %1388 = shalt.err (!%p1385_p12)
}
 0x7e7   :  { %1099 = dma.vmem_to_hbm [thread:$0]  %s1097_s10, 128, %s1678_s19, [#allocation3]  }
 0x7e8   :  { %1391 = dma.done.wait [#allocation3], 128  }
 0x7e9   :  { %1392 = vsyncadd [#allocation3], 4294967168 }
 0x7ea   :  { %1103 = vsyncpa [#allocation3], 1 }
 0x7eb   :  { %1104 = vsyncpa [#allocation4], 1 }

</bundles_post_ra>
